<compile_context>
chip_gen: v7x
topology: tpu7x:2x2x1
jax: 0.10.0
libtpu: 0.0.40
codegen_flags: <defaults>
</compile_context>

<pallas_src>
import math

import jax
import jax.numpy as jnp
from jax.experimental import pallas as pl
from jax.experimental.pallas import tpu as pltpu


def _attention_kernel(h_ref, wT_ref, b_ref, v_ref, o_ref):
    # h_ref : (Bb, T, H)  hidden states for Bb batch rows
    # wT_ref: (H, H)      pre-transposed Linear weight (y = x @ W^T + b)
    # b_ref : (1, H)      Linear bias
    # v_ref : (1, H)      attention vector
    # o_ref : (Bb, H)     context output
    Bb, T, H = h_ref.shape
    h = h_ref[...]                                               # (Bb, T, H)

    # ---- Linear + tanh: one flattened (Bb*T, H) @ (H, H) MXU matmul ------
    s = jnp.dot(h.reshape(Bb * T, H), wT_ref[...],
                preferred_element_type=jnp.float32)              # (Bb*T, H)
    s = jnp.tanh(s + b_ref[...])                                 # (Bb*T, H)
    s = s.reshape(Bb, T, H)

    # ---- scores = s @ v   (reduce over H, per batch row) -----------------
    scores = jnp.sum(s * v_ref[...], axis=-1)                    # (Bb, T)

    # ---- numerically-stable softmax over T (per batch row) ---------------
    m = jnp.max(scores, axis=-1, keepdims=True)                  # (Bb, 1)
    e = jnp.exp(scores - m)                                      # (Bb, T)
    denom = jnp.sum(e, axis=-1, keepdims=True)                   # (Bb, 1)
    inv = pl.reciprocal(denom, approx=False)                     # (Bb, 1)

    if T <= H:
        # Fewer multiplies: normalize the T exp-scores, not the H-wide ctx.
        w = e * inv                                              # (Bb, T)
        ctx = jnp.einsum("bqt,bth->bqh", w[:, None, :], h,
                         preferred_element_type=jnp.float32)[:, 0, :]
        o_ref[...] = ctx.astype(o_ref.dtype)
    else:
        ctx = jnp.einsum("bqt,bth->bqh", e[:, None, :], h,
                         preferred_element_type=jnp.float32)[:, 0, :]
        o_ref[...] = (ctx * inv).astype(o_ref.dtype)


def _pick_batch_tile(B, T, H, itemsize, target_bytes=2 << 20):
    """Largest divisor of B whose (Bb, T, H) tile stays within ~2 MiB.

    Prefers Bb that keeps the (Bb, H) output block sublane-friendly
    (multiple of 8, or the whole batch).
    """
    candidates = [bb for bb in range(1, B + 1)
                  if B % bb == 0 and bb * T * H * itemsize <= target_bytes]
    if not candidates:
        return 1
    friendly = [bb for bb in candidates if bb == B or bb % 8 == 0]
    return max(friendly) if friendly else max(candidates)


def attention_forward(hidden_states, w, b, v, *, block_b=None):
    """hidden_states: (B, T, H); w: (H, H); b: (H,); v: (H,) -> (B, H)."""
    B, T, H = hidden_states.shape
    itemsize = hidden_states.dtype.itemsize
    if block_b is None:
        block_b = _pick_batch_tile(B, T, H, itemsize)
    assert B % block_b == 0, "block_b must divide B"
    grid_b = B // block_b

    # Pre-transpose W once outside the kernel (PyTorch Linear: y = x @ W^T + b)
    wT = jnp.asarray(w).T
    b2 = b.reshape(1, H)
    v2 = v.reshape(1, H)

    flops = 2 * B * T * H * H + 4 * B * T * H + 2 * B * T * H   # linear + scores + ctx
    transcendentals = B * T * (H + 1)                           # tanh + exp
    bytes_accessed = (B * T * H * itemsize + H * H * 4 + 2 * H * 4
                      + B * H * itemsize)

    return pl.pallas_call(
        _attention_kernel,
        out_shape=jax.ShapeDtypeStruct((B, H), hidden_states.dtype),
        grid_spec=pltpu.PrefetchScalarGridSpec(
            num_scalar_prefetch=0,
            grid=(grid_b,),
            in_specs=[
                pl.BlockSpec((block_b, T, H), lambda i: (i, 0, 0)),  # hidden states
                pl.BlockSpec((H, H), lambda i: (0, 0)),              # W^T (constant)
                pl.BlockSpec((1, H), lambda i: (0, 0)),              # bias (constant)
                pl.BlockSpec((1, H), lambda i: (0, 0)),              # v    (constant)
            ],
            out_specs=pl.BlockSpec((block_b, H), lambda i: (i, 0)),
        ),
        compiler_params=pltpu.CompilerParams(
            dimension_semantics=("parallel",),
            vmem_limit_bytes=64 * 1024 * 1024,
        ),
        cost_estimate=pl.CostEstimate(
            flops=flops,
            transcendentals=transcendentals,
            bytes_accessed=bytes_accessed,
        ),
    )(hidden_states, wT, b2, v2)


def attention_reference(hidden_states, w, b, v):
    s = jnp.tanh(jnp.einsum("bth,oh->bto", hidden_states, w) + b)
    scores = jnp.einsum("bth,h->bt", s, v)
    weights = jax.nn.softmax(scores, axis=1)
    return jnp.einsum("bt,bth->bh", weights, hidden_states)


if __name__ == "__main__":
    B, T, H = 2, 8, 32

    key = jax.random.PRNGKey(0)
    k_h, k_w, k_b, k_v = jax.random.split(key, 4)

    hidden_states = jax.random.normal(k_h, (B, T, H), dtype=jnp.float32)
    # Deterministic parameter init (same shapes as nn.Linear(H, H) and
    # nn.Parameter(torch.randn(H))).
    bound = 1.0 / math.sqrt(H)
    w = jax.random.uniform(k_w, (H, H), minval=-bound, maxval=bound,
                           dtype=jnp.float32)
    b = jax.random.uniform(k_b, (H,), minval=-bound, maxval=bound,
                           dtype=jnp.float32)
    v = jax.random.normal(k_v, (H,), dtype=jnp.float32)

    out = attention_forward(hidden_states, w, b, v)
    out = jax.block_until_ready(out)

    ref = attention_reference(hidden_states, w, b, v)
    assert out.shape == (B, H)
    assert jnp.allclose(out, ref, atol=1e-5, rtol=1e-5)

    print("KERNEL_OK")
</pallas_src>

<mosaic_0001>
module attributes {stable_mosaic.version = 11 : i64} {
  func.func @_attention_kernel(%arg0: i32, %arg1: memref<2x8x32xf32, #tpu.memory_space<vmem>>, %arg2: memref<32x32xf32, #tpu.memory_space<vmem>>, %arg3: memref<1x32xf32, #tpu.memory_space<vmem>>, %arg4: memref<1x32xf32, #tpu.memory_space<vmem>>, %arg5: memref<2x32xf32, #tpu.memory_space<vmem>>) attributes {dimension_semantics = [#tpu.dimension_semantics<parallel>], iteration_bounds = array<i64: 1>, scalar_prefetch = 0 : i64, scratch_operands = 0 : i64, tpu.core_type = #tpu.core_type<tc>, window_params = [{transform_indices = @transform_0, window_bounds = array<i64: 2, 8, 32>}, {pipeline_mode = #tpu.pipeline_mode<synchronous>, transform_indices = @transform_1, window_bounds = array<i64: 32, 32>}, {pipeline_mode = #tpu.pipeline_mode<synchronous>, transform_indices = @transform_2, window_bounds = array<i64: 1, 32>}, {pipeline_mode = #tpu.pipeline_mode<synchronous>, transform_indices = @transform_3, window_bounds = array<i64: 1, 32>}, {transform_indices = @transform_4, window_bounds = array<i64: 2, 32>}]} {
    %c0 = arith.constant 0 : index
    %c0_0 = arith.constant 0 : index
    %c0_1 = arith.constant 0 : index
    %0 = vector.load %arg1[%c0, %c0_0, %c0_1] : memref<2x8x32xf32, #tpu.memory_space<vmem>>, vector<2x8x32xf32>
    %1 = vector.shape_cast %0 : vector<2x8x32xf32> to vector<16x32xf32>
    %c0_2 = arith.constant 0 : index
    %c0_3 = arith.constant 0 : index
    %2 = vector.load %arg2[%c0_2, %c0_3] : memref<32x32xf32, #tpu.memory_space<vmem>>, vector<32x32xf32>
    %cst = arith.constant dense<0.000000e+00> : vector<16x32xf32>
    %3 = tpu.matmul %1, %2, %cst {dimension_numbers = #tpu.dot_dimension_numbers<[1], [0], [0], [1], [0, 0, 1, 1], [], []>} : vector<16x32xf32>, vector<32x32xf32>, vector<16x32xf32> -> vector<16x32xf32>
    %c0_4 = arith.constant 0 : index
    %c0_5 = arith.constant 0 : index
    %4 = vector.load %arg3[%c0_4, %c0_5] : memref<1x32xf32, #tpu.memory_space<vmem>>, vector<1x32xf32>
    %5 = vector.broadcast %4 : vector<1x32xf32> to vector<16x32xf32>
    %6 = arith.addf %3, %5 : vector<16x32xf32>
    %7 = math.tanh %6 : vector<16x32xf32>
    %8 = vector.shape_cast %7 : vector<16x32xf32> to vector<2x8x32xf32>
    %c0_6 = arith.constant 0 : index
    %c0_7 = arith.constant 0 : index
    %9 = vector.load %arg4[%c0_6, %c0_7] : memref<1x32xf32, #tpu.memory_space<vmem>>, vector<1x32xf32>
    %10 = vector.shape_cast %9 : vector<1x32xf32> to vector<1x1x32xf32>
    %11 = vector.broadcast %10 : vector<1x1x32xf32> to vector<2x8x32xf32>
    %12 = arith.mulf %8, %11 : vector<2x8x32xf32>
    %cst_8 = arith.constant dense<0.000000e+00> : vector<2x8xf32>
    %13 = vector.multi_reduction <add>, %12, %cst_8 [2] : vector<2x8x32xf32> to vector<2x8xf32>
    %cst_9 = arith.constant dense<0xFF800000> : vector<2xf32>
    %14 = vector.multi_reduction <maximumf>, %13, %cst_9 [1] : vector<2x8xf32> to vector<2xf32>
    %15 = vector.shape_cast %14 : vector<2xf32> to vector<2x1xf32>
    %16 = vector.broadcast %15 : vector<2x1xf32> to vector<2x8xf32>
    %17 = arith.subf %13, %16 : vector<2x8xf32>
    %18 = math.exp %17 : vector<2x8xf32>
    %cst_10 = arith.constant dense<0.000000e+00> : vector<2xf32>
    %19 = vector.multi_reduction <add>, %18, %cst_10 [1] : vector<2x8xf32> to vector<2xf32>
    %20 = vector.shape_cast %19 : vector<2xf32> to vector<2x1xf32>
    %21 = tpu.reciprocal %20 : vector<2x1xf32> -> vector<2x1xf32>
    %22 = vector.broadcast %21 : vector<2x1xf32> to vector<2x8xf32>
    %23 = arith.mulf %18, %22 : vector<2x8xf32>
    %24 = vector.shape_cast %23 : vector<2x8xf32> to vector<2x1x8xf32>
    "tpu.trace_start"() <{level = 10 : i32, message = "bqt,bth->bqh"}> : () -> ()
    %cst_11 = arith.constant dense<0.000000e+00> : vector<2x1x32xf32>
    %25 = tpu.matmul %24, %0, %cst_11 {dimension_numbers = #tpu.dot_dimension_numbers<[2], [1], [1], [2], [0, 0, 0, 1, 1, 2], [0], [0]>} : vector<2x1x8xf32>, vector<2x8x32xf32>, vector<2x1x32xf32> -> vector<2x1x32xf32>
    "tpu.trace_stop"() : () -> ()
    %26 = vector.shape_cast %25 : vector<2x1x32xf32> to vector<2x32xf32>
    %c0_12 = arith.constant 0 : index
    %c0_13 = arith.constant 0 : index
    %27 = vector.load %arg5[%c0_12, %c0_13] : memref<2x32xf32, #tpu.memory_space<vmem>>, vector<2x32xf32>
    tpu.vector_store %arg5[%c0_12, %c0_13], %26 {strides = array<i32>} : memref<2x32xf32, #tpu.memory_space<vmem>>, vector<2x32xf32>,
    return
  }
  func.func @transform_0(%arg0: i32) -> (i32, i32, i32) {
    %c0_i32 = arith.constant 0 : i32
    %c0_i32_0 = arith.constant 0 : i32
    %c0_i32_1 = arith.constant 0 : i32
    return %arg0, %c0_i32, %c0_i32_0 : i32, i32, i32
  }
  func.func @transform_1(%arg0: i32) -> (i32, i32) {
    %c0_i32 = arith.constant 0 : i32
    %c0_i32_0 = arith.constant 0 : i32
    %c0_i32_1 = arith.constant 0 : i32
    return %c0_i32, %c0_i32_0 : i32, i32
  }
  func.func @transform_2(%arg0: i32) -> (i32, i32) {
    %c0_i32 = arith.constant 0 : i32
    %c0_i32_0 = arith.constant 0 : i32
    %c0_i32_1 = arith.constant 0 : i32
    return %c0_i32, %c0_i32_0 : i32, i32
  }
  func.func @transform_3(%arg0: i32) -> (i32, i32) {
    %c0_i32 = arith.constant 0 : i32
    %c0_i32_0 = arith.constant 0 : i32
    %c0_i32_1 = arith.constant 0 : i32
    return %c0_i32, %c0_i32_0 : i32, i32
  }
  func.func @transform_4(%arg0: i32) -> (i32, i32) {
    %c0_i32 = arith.constant 0 : i32
    %c0_i32_0 = arith.constant 0 : i32
    return %arg0, %c0_i32 : i32, i32
  }
}

</mosaic_0001>

<bundles_post_ra>
// kernel: tpu_custom_call.1
= control target key start
LH: loop header
LB: loop body
LE: loop exit
PB: predicated region body
PF: predicated region fallthrough
CT: control target
= control target key end

     0   :  { %9 = vsyncpa [#allocation3], 0  ;;  %s741_s0 = inlined_call_operand.hbm [shape: f32[2,8,32], index: 0, kind: input, shape index: {}]   ;;  %s742_s1 = inlined_call_operand.hbm [shape: f32[32,32], index: 1, kind: input, shape index: {}]   ;;  %s743_s2 = inlined_call_operand.hbm [shape: f32[1,32], index: 2, kind: input, shape index: {}]   ;;  %s744_s3 = inlined_call_operand.hbm [shape: f32[1,32], index: 3, kind: input, shape index: {}]   ;;  %s745_s4 = inlined_call_operand.hbm [shape: f32[2,32], index: 4, kind: output, shape index: {}]  }
   0x1   :  { %10 = vsyncpa [#allocation6], 0 }
   0x2   :  { %11 = vsyncpa [#allocation9], 0 }
   0x3   :  { %12 = vsyncpa [#allocation4], 0  ;;  %s622_s15 = smov [#allocation5]   ;;  %s623_s17 = smov [#allocation2]  }
   0x4   :  { %s30_s16 = sshll.u32 %s622_s15, 4  ;;  %s18_s18 = sshll.u32 %s623_s17, 4  ;;  %s31_s16 = int_to_ptr.vmem [resolvable:$true] %s30_s16  ;;  %s657_s18 = int_to_ptr.vmem [resolvable:$true] %s18_s18 }
   0x5   :  { %s504_s21 = scalar_lea.hbm %s742_s1, 512 }
   0x6   :  { %p505_p0 = scmp.ne.s32.totalorder %s742_s1, %s504_s21  ;;  %p508_p1 = scmp.lt.u32.totalorder %s504_s21, %s742_s1 }
   0x8   :  { %p510_p2 = pnand %p508_p1, %p505_p0 }
   0xa   :  { %513 = shalt.err (!%p510_p2)
}
   0xb   :  { %s514_s26 = scalar_lea.vmem %s31_s16, 512  ;;  %p519_p4 = scmp.lt.s32.totalorder %s31_s16, %s31_s16 }
   0xc   :  { %p515_p3 = scmp.ne.s32.totalorder %s31_s16, %s514_s26  ;;  %p520_p5 = scmp.lt.s32.totalorder %s514_s26, %s514_s26 }
   0xe   :  { %p521_p6 = por %p520_p5, %p519_p4 }
  0x10   :  { %p522_p7 = pnand %p521_p6, %p515_p3 }
  0x12   :  { %525 = shalt.err (!%p522_p7)
}
  0x13   :  { %s624_s27 = smov 128   ;;  %s625_s28 = smov 8  }
  0x14   :  { %36 = dma.hbm_to_vmem [thread:$0]  %s742_s1, 512, %s31_s16, [#allocation6], %s624_s27, %s624_s27, %s625_s28  }
  0x15   :  { %s526_s7 = scalar_lea.hbm %s741_s0, 256 }
  0x16   :  { %p527_p8 = scmp.ne.s32.totalorder %s741_s0, %s526_s7  ;;  %p530_p9 = scmp.lt.u32.totalorder %s526_s7, %s741_s0 }
  0x18   :  { %p532_p10 = pnand %p530_p9, %p527_p8 }
  0x1a   :  { %535 = shalt.err (!%p532_p10)
}
  0x1b   :  { %s536_s12 = scalar_lea.vmem %s657_s18, 256  ;;  %p541_p12 = scmp.lt.s32.totalorder %s657_s18, %s657_s18 }
  0x1c   :  { %p537_p11 = scmp.ne.s32.totalorder %s657_s18, %s536_s12  ;;  %p542_p13 = scmp.lt.s32.totalorder %s536_s12, %s536_s12 }
  0x1e   :  { %p543_p0 = por %p542_p13, %p541_p12 }
  0x20   :  { %p544_p1 = pnand %p543_p0, %p537_p11 }
  0x22   :  { %547 = shalt.err (!%p544_p1)
}
  0x23   :  { %24 = dma.hbm_to_vmem [thread:$0]  %s741_s0, 256, %s657_s18, [#allocation3], %s624_s27, %s624_s27, %s625_s28  }
  0x24   :  { %s626_s14 = smov [#allocation7]   ;;  %s627_s16 = smov [#allocation8]  }
  0x25   :  { %s43_s15 = sshll.u32 %s626_s14, 4  ;;  %s53_s17 = sshll.u32 %s627_s16, 4  ;;  %s44_s15 = int_to_ptr.vmem [resolvable:$true] %s43_s15  ;;  %s54_s17 = int_to_ptr.vmem [resolvable:$true] %s53_s17 }
  0x26   :  { %s548_s21 = scalar_lea.hbm %s743_s2, 16 }
  0x27   :  { %p549_p2 = scmp.ne.s32.totalorder %s743_s2, %s548_s21  ;;  %p552_p3 = scmp.lt.u32.totalorder %s548_s21, %s743_s2 }
  0x29   :  { %p554_p4 = pnand %p552_p3, %p549_p2 }
  0x2b   :  { %557 = shalt.err (!%p554_p4)
}
  0x2c   :  { %s558_s0 = scalar_lea.vmem %s44_s15, 16  ;;  %s562_s18 = scalar_lea.vmem %s44_s15, 32 }
  0x2d   :  { %p559_p5 = scmp.ne.s32.totalorder %s44_s15, %s558_s0  ;;  %p563_p6 = scmp.lt.s32.totalorder %s44_s15, %s44_s15 }
  0x2e   :  { %p564_p7 = scmp.lt.s32.totalorder %s562_s18, %s558_s0 }
  0x30   :  { %p565_p8 = por %p564_p7, %p563_p6 }
  0x32   :  { %p566_p9 = pnand %p565_p8, %p559_p5 }
  0x34   :  { %569 = shalt.err (!%p566_p9)
}
  0x35   :  { %46 = dma.hbm_to_vmem [thread:$0]  %s743_s2, 16, %s44_s15, [#allocation6]  }
  0x36   :  { %s570_s30 = scalar_lea.hbm %s744_s3, 16 }
  0x37   :  { %p571_p10 = scmp.ne.s32.totalorder %s744_s3, %s570_s30  ;;  %p574_p11 = scmp.lt.u32.totalorder %s570_s30, %s744_s3 }
  0x39   :  { %p576_p12 = pnand %p574_p11, %p571_p10 }
  0x3b   :  { %579 = shalt.err (!%p576_p12)
}
  0x3c   :  { %s580_s9 = scalar_lea.vmem %s54_s17, 16  ;;  %s584_s10 = scalar_lea.vmem %s54_s17, 32 }
  0x3d   :  { %p581_p13 = scmp.ne.s32.totalorder %s54_s17, %s580_s9  ;;  %p585_p0 = scmp.lt.s32.totalorder %s54_s17, %s54_s17 }
  0x3e   :  { %p586_p1 = scmp.lt.s32.totalorder %s584_s10, %s580_s9 }
  0x40   :  { %p587_p2 = por %p586_p1, %p585_p0 }
  0x42   :  { %p588_p3 = pnand %p587_p2, %p581_p13 }
  0x44   :  { %591 = shalt.err (!%p588_p3)
}
  0x45   :  { %56 = dma.hbm_to_vmem [thread:$0]  %s744_s3, 16, %s54_s17, [#allocation9]  }
  0x46   :  { %614 = dma.done.wait [#allocation3], 256  }
  0x47   :  { %615 = vsyncadd [#allocation3], 4294967040 }
  0x48   :  { %616 = dma.done.wait [#allocation6], 528  }
  0x49   :  { %617 = vsyncadd [#allocation6], 4294966768 }
  0x4a   :  { %618 = dma.done.wait [#allocation9], 16  }
  0x4b   :  { %619 = vsyncadd [#allocation9], 4294967280  ;;  %vm82_vm0 = vcmask 261120   ;;  %v71_v0 = vld [vmem:[#allocation5] sm:$0xff]  ;;  %v72_v1 = vld [vmem:[#allocation5 + $0x8] sm:$0xff]  ;;  %v183_v20 = vlaneseq  ;;  %vm193_vm1 = vcmask 1041409  }
  0x4c   :  { %v73_v2 = vld [vmem:[#allocation5 + $0x10] sm:$0xff]  ;;  %v474_v3 = vpack.c.bf16 %v72_v1, %v71_v0  ;;  %v74_v4 = vld [vmem:[#allocation5 + $0x18] sm:$0xff]  ;;  %v437_v8 = vld [vmem:[#allocation7] ss:$0 sm:$0xff]  ;;  %vm196_vm2 = vcmask 58368   ;;  %v628_v30 = vmov 0  }
  0x4d   :  { %v712_v5 = vld [vmem:[#allocation2] sm:$0xff]  ;;  %v478_v6 = vpack.c.bf16 %v74_v4, %v73_v2  ;;  %v716_v7 = vld [vmem:[#allocation2 + $0x8] sm:$0xff]  ;;  %v440_v13 = vld [vmem:[#allocation8] ss:$0 sm:$0xff]  ;;  %v184_v21 = vand.u32 127, %v183_v20  ;;  %v186_v22 = vshrl.u32 %v183_v20, 7  ;;  %493 = vset.pattern.permute.xlu0 %v628_v30  ;;  %492 = vset.pattern.permute.xlu1 %v628_v30 }
  0x4e   :  { %461 = vmatprep.mubr.msk.f32.mxu0 %vm82_vm0, %v712_v5  ;;  %475 = vmatprep.subr.bf16.mxu0 %v474_v3  ;;  %v629_v48 = vmov 0.0   ;;  %vm630_vm3 = vmmov 0   ;;  %vm260_vm4 = vcmask 64512   ;;  %s631_s3 = smov [#allocation10]   ;;  %vm418_vm5 = vcmask 254976  }
  0x4f   :  { %477 = vmatpush3.bf16.msra.mxu0 %v474_v3  ;;  %v187_v24 = vsub.s32 %v184_v21, %v186_v22  ;;  %v203_v31 = vsub.s32 0, %v186_v22  ;;  %v207_v32 = vsub.s32 1, %v186_v22  ;;  %464 = vmatprep.subr.mxu1 %v629_v48  ;;  %s426_s12 = sshll.u32 %s631_s3, 4  ;;  %s427_s12 = int_to_ptr.vmem [resolvable:$true] %s426_s12 }
  0x50   :  { %479 = vmatprep.subr.bf16.mxu0 %v478_v6  ;;  %465 = vmatpush3.msra.mxu1 %v712_v5  ;;  %s592_s1 = scalar_lea.vmem %s427_s12, 32  ;;  %p597_p5 = scmp.lt.s32.totalorder %s427_s12, %s427_s12 }
  0x51   :  { %469 = vmatprep.subr.mxu1 %v629_v48  ;;  %466 = vmatprep.mubr.msk.f32.mxu1 %vm630_vm3, %v629_v48  ;;  %p593_p4 = scmp.ne.s32.totalorder %s427_s12, %s592_s1  ;;  %p598_p6 = scmp.lt.s32.totalorder %s592_s1, %s592_s1 }
  0x53   :  { %481 = vmatpush3.bf16.msra.mxu0 %v478_v6  ;;  %p599_p7 = por %p598_p6, %p597_p5 }
  0x55   :  { %p600_p8 = pnand %p599_p7, %p593_p4 }
  0x56   :  { %462 = vmatmul.mubr.msk.f32.vlgmr.msra.gmra.mrb[0].mxu0 %vm82_vm0, %v716_v7 }
 0x129   :  { %v463_v9 = vpop.f32.mrb[0].mxu0 }
 0x12a   :  { %v161_v10 = vadd.f32 %v463_v9, %v437_v8  ;;  %v155_v11 = vpop.f32.mrb[1].mxu0 }
 0x12b   :  { %v156_v12 = vadd.f32 %v437_v8, %v155_v11 }
 0x12c   :  { %494 = vtanh.f32 %v161_v10 }
 0x12d   :  { %496 = vtanh.f32 %v156_v12 }
 0x136   :  { %v495_v14 = vpop.eup %494 }
 0x137   :  { %v497_v15 = vpop.eup %496  ;;  %v174_v18 = vmul.f32 %v495_v14, %v440_v13 }
 0x138   :  { %v173_v16 = vmul.f32 %v497_v15, %v440_v13 }
 0x139   :  { %v178_v19 = vsel %vm82_vm0, %v174_v18, 0.0 }
 0x13a   :  { %v175_v17 = vsel %vm82_vm0, %v173_v16, 0.0 }
 0x13b   :  { %176 = vadd.xlane.f32.xlu0 %v175_v17 }
 0x13f   :  { %179 = vadd.xlane.f32.xlu0 %v178_v19 }
 0x1c8   :  { %v177_v23 = vpop.xlane.xlu0 %176 }
 0x1c9   :  { %v188_v26 = vrot.slane %v177_v23, %v187_v24 }
 0x1cc   :  { %v180_v25 = vpop.xlane.xlu0 %179 }
 0x1cd   :  { %v192_v27 = vrot.slane %v180_v25, %v187_v24 }
 0x1cf   :  { %v194_v28 = vsel %vm193_vm1, %v192_v27, %v188_v26 }
 0x1d0   :  { %v197_v29 = vsel %vm196_vm2, %v194_v28, -inf }
 0x1d1   :  { %198 = vmax.xlane.f32.xlu1 %v197_v29 }
 0x25e   :  { %v199_v33 = vpop.xlane.xlu1 %198 }
 0x25f   :  { %v204_v34 = vrot.slane %v199_v33, %v203_v31  ;;  %v208_v35 = vrot.slane %v199_v33, %v207_v32 }
 0x261   :  { %v211_v36 = vsub.f32 %v177_v23, %v204_v34  ;;  %v212_v37 = vsub.f32 %v180_v25, %v208_v35 }
 0x263   :  { %v213_v38 = vmul.f32 1.442695, %v211_v36  ;;  %v215_v39 = vmul.f32 1.442695, %v212_v37 }
 0x265   :  { %498 = vpow2.f32 %v213_v38 }
 0x266   :  { %500 = vpow2.f32 %v215_v39 }
 0x26f   :  { %v499_v40 = vpop.eup %498 }
 0x270   :  { %v501_v41 = vpop.eup %500  ;;  %220 = vperm.xlu1 %492, %v499_v40  }
 0x271   :  { %223 = vperm.xlu0 %493, %v501_v41  }
 0x2ef   :  { %v221_v42 = vpop.permute.xlu1 %220 }
 0x2f0   :  { %v224_v43 = vpop.permute.xlu0 %223  ;;  %v228_v44 = vrot.slane %v221_v42, %v187_v24 }
 0x2f1   :  { %v232_v45 = vrot.slane %v224_v43, %v187_v24 }
 0x2f3   :  { %v233_v46 = vsel %vm193_vm1, %v232_v45, %v228_v44 }
 0x2f4   :  { %v235_v47 = vsel %vm196_vm2, %v233_v46, 0.0 }
 0x2f5   :  { %236 = vadd.xlane.f32.xlu1 %v235_v47 }
 0x382   :  { %v237_v49 = vpop.xlane.xlu1 %236 }
 0x383   :  { %502 = vrcp.f32 %v237_v49 }
 0x38d   :  { %v503_v50 = vpop.eup %502 }
 0x38e   :  { %v243_v51 = vrot.slane %v503_v50, %v203_v31  ;;  %v247_v53 = vrot.slane %v503_v50, %v207_v32 }
 0x390   :  { %v250_v52 = vmul.f32 %v499_v40, %v243_v51  ;;  %v251_v54 = vmul.f32 %v501_v41, %v247_v53 }
 0x392   :  { %254 = vperm.xlu0 %493, %v250_v52  }
 0x396   :  { %335 = vperm.xlu0 %493, %v251_v54  }
 0x411   :  { %v255_v55 = vpop.permute.xlu0 %254 }
 0x412   :  { %v259_v56 = vrot.slane %v255_v55, %v187_v24 }
 0x414   :  { %467 = vmatmul.mubr.msk.f32.vlgmr.msra.gmra.mrb[0].mxu1 %vm260_vm4, %v259_v56 }
 0x415   :  { %470 = vmatpush3.msra.mxu1 %v716_v7  ;;  %v336_v57 = vpop.permute.xlu0 %335  ;;  %471 = vmatprep.mubr.msk.f32.mxu1 %vm630_vm3, %v629_v48 }
 0x416   :  { %v340_v58 = vrot.slane %v336_v57, %v187_v24 }
 0x418   :  { %472 = vmatmul.mubr.msk.f32.vlgmr.msra.gmra.mrb[2].mxu1 %vm260_vm4, %v340_v58 }
 0x4e7   :  { %v329_v59 = vpop.f32.mrb[0].mxu1 }
 0x4e8   :  { %v468_v60 = vpop.f32.mrb[1].mxu1 }
 0x4eb   :  { %v409_v61 = vpop.f32.mrb[2].mxu1 }
 0x4ec   :  { %v415_v62 = vrot.slane %v409_v61, 7  ;;  %v473_v63 = vpop.f32.mrb[3].mxu1 }
 0x4ee   :  { %v416_v0 = vsel %vm193_vm1, %v415_v62, %v329_v59 }
 0x4ef   :  { %419 = vst.msk [vmem:[#allocation10] sm:$0x3] %vm418_vm5, %v416_v0 }
 0x4f0   :  { %603 = shalt.err (!%p600_p8)
}
 0x4f1   :  { %s604_s15 = scalar_lea.hbm %s745_s4, 32 }
 0x4f2   :  { %p605_p9 = scmp.ne.s32.totalorder %s745_s4, %s604_s15  ;;  %p608_p10 = scmp.lt.u32.totalorder %s604_s15, %s745_s4 }
 0x4f4   :  { %p610_p11 = pnand %p608_p10, %p605_p9 }
 0x4f6   :  { %613 = shalt.err (!%p610_p11)
}
 0x4f7   :  { %429 = dma.vmem_to_hbm [thread:$0]  %s427_s12, 32, %s745_s4, [#allocation4]  }
 0x4f8   :  { %620 = dma.done.wait [#allocation4], 32  }
 0x4f9   :  { %621 = vsyncadd [#allocation4], 4294967264 }
 0x4fa   :  { %433 = vsyncpa [#allocation3], 1 }
 0x4fb   :  { %434 = vsyncpa [#allocation6], 1 }
 0x4fc   :  { %435 = vsyncpa [#allocation9], 1 }
 0x4fd   :  { %436 = vsyncpa [#allocation4], 1 }

</bundles_post_ra>
